<compile_context>
chip_gen: v5e
topology: v5e:2x2
jax: 0.10.0
libtpu: 0.0.40
codegen_flags: <defaults>
</compile_context>

<pallas_src>
import functools

import jax
import jax.numpy as jnp
import numpy as np
from jax.experimental import pallas as pl
from jax.experimental.pallas import tpu as pltpu


def _decoder_block_kernel(x_ref, a0_ref, a1_ref, wr_ref, o_ref, *,
                          dilations, t_len):
    """Runs the full decoder stack on one batch-group block.

    x_ref : (G*C_res, T)       rows = packed channels of G batch elements
    a0_ref: (L, G*C_dil, G*C_res)   block-diagonal deconv tap 0 per layer
    a1_ref: (L, G*C_dil, G*C_res)   block-diagonal deconv tap 1 per layer
    wr_ref: (L, G*C_res, G*C_dil)   block-diagonal 1x1 residual conv per layer
    o_ref : (G*C_res, T)
    """
    x = x_ref[...].astype(jnp.float32)                         # (GR, T)
    mm_dtype = a0_ref.dtype
    # (1, T) time index used for the t < d mask; broadcast by jnp.where.
    t_lane = jax.lax.broadcasted_iota(jnp.int32, (1, t_len), 1)

    # Static unrolled layer loop: L is small and each layer's weights are only
    # (G*C)^2 elements.  TODO(synk): for large L, move layers onto an inner
    # "arbitrary" grid axis with per-layer weight BlockSpecs so only one
    # layer's (prefetched) weights are resident at a time.
    for li, d in enumerate(dilations):
        h = jnp.maximum(x, 0.0)                                # relu (VPU)
        # hs[:, t] = h[:, t-d], zero for t < d (d is static per layer).
        if d >= t_len:
            hs = jnp.zeros_like(h)
        elif t_len % 128 == 0:
            # Lane-aligned fast path: XLU rotate + VPU mask, no VMEM copy.
            hs = jnp.where(t_lane >= d, pltpu.roll(h, shift=d, axis=1), 0.0)
        else:
            # Unaligned-T fallback: one block-sized shift copy.
            hs = jnp.concatenate(
                [jnp.zeros((h.shape[0], d), h.dtype), h[:, :t_len - d]],
                axis=1)
        # ConvTranspose taps as two MXU dots with f32 accumulate (no concat).
        y = (jnp.dot(a0_ref[li], h.astype(mm_dtype),
                     preferred_element_type=jnp.float32)
             + jnp.dot(a1_ref[li], hs.astype(mm_dtype),
                       preferred_element_type=jnp.float32))    # (GD, T)
        # 1x1 residual conv on relu(y), then skip connection (kept in f32).
        z = jnp.dot(wr_ref[li], jnp.maximum(y, 0.0).astype(mm_dtype),
                    preferred_element_type=jnp.float32)        # (GR, T)
        x = x + z
    o_ref[...] = x.astype(o_ref.dtype)


def _pick_group(batch, channels, target_rows=128, min_blocks=2):
    """Batch elements packed per block: aim for ~128 rows for MXU density, but
    keep at least `min_blocks` grid steps for DMA pipelining / v7x megacore
    whenever the batch size allows it."""
    gmax = max(1, min(batch, target_rows // max(1, channels)))
    candidates = [g for g in range(gmax, 0, -1) if batch % g == 0]
    for g in candidates:
        if batch // g >= min_blocks:
            return g
    return candidates[0]


def decoder_block_pallas(x_nct, deconv_ws, res_ws, dilations, *,
                         group_size=None, matmul_dtype=jnp.float32):
    """x_nct: (N, C_res, T) float32 in PyTorch NCT layout.  Returns (N, C_res, T).

    deconv_ws[l]: (C_res, C_dil, 2)  ConvTranspose1d weights
    res_ws[l]   : (C_res, C_dil, 1)  Conv1d(k=1) weights
    group_size  : batch elements packed per grid block (block-diagonal
                  weights); default heuristic targets ~128 rows while keeping
                  >= 2 grid steps.
    matmul_dtype: jnp.bfloat16 for the v6e/v7x bf16 MXU rate (~1e-2 vs f32
                  reference); default f32 matches the PyTorch module closely.
    """
    N, C_res, T = x_nct.shape
    L = len(dilations)
    C_dil = deconv_ws[0].shape[1]

    G = group_size if group_size is not None else _pick_group(N, max(C_res, C_dil))
    assert N % G == 0, "group_size must divide the batch size"
    GR, GD = G * C_res, G * C_dil
    assert GR % 8 == 0, "group_size * residual_channels must be a multiple of 8"
    nblocks = N // G

    # --- pack weights: block-diagonal kron(I_G, W), stacked over layers ------
    eye = jnp.eye(G, dtype=jnp.float32)
    a0 = jnp.stack([jnp.kron(eye, deconv_ws[l][:, :, 0].T) for l in range(L)])
    a1 = jnp.stack([jnp.kron(eye, deconv_ws[l][:, :, 1].T) for l in range(L)])
    wr = jnp.stack([jnp.kron(eye, res_ws[l][:, :, 0]) for l in range(L)])
    a0 = a0.astype(matmul_dtype)                     # (L, GD, GR)
    a1 = a1.astype(matmul_dtype)                     # (L, GD, GR)
    wr = wr.astype(matmul_dtype)                     # (L, GR, GD)

    # --- input: (N, C, T) -> (N*C, T) is a free, contiguous reshape ----------
    x2 = x_nct.reshape(N * C_res, T).astype(jnp.float32)

    # --- VMEM budget: in/out blocks double-buffered + weights + ~6 live temps.
    itemsize = jnp.dtype(matmul_dtype).itemsize
    blk_bytes = max(GR, GD) * T * 4
    w_bytes = int(a0.size + a1.size + wr.size) * itemsize
    vmem_est = 4 * blk_bytes + 2 * w_bytes + 6 * blk_bytes
    vmem_limit = int(min(max(2 * vmem_est, 32 << 20), 64 << 20))

    kernel = functools.partial(_decoder_block_kernel,
                               dilations=tuple(int(d) for d in dilations),
                               t_len=T)
    # Weights have a constant index_map so Pallas only DMAs them once; the
    # spare double buffer is negligible at these sizes (pl.Buffered(1) would
    # reclaim it for very large L / C).
    out2 = pl.pallas_call(
        kernel,
        out_shape=jax.ShapeDtypeStruct((N * C_res, T), jnp.float32),
        grid_spec=pltpu.PrefetchScalarGridSpec(
            num_scalar_prefetch=0,
            grid=(nblocks,),
            in_specs=[
                pl.BlockSpec((GR, T), lambda i: (i, 0)),
                pl.BlockSpec((L, GD, GR), lambda i: (0, 0, 0)),
                pl.BlockSpec((L, GD, GR), lambda i: (0, 0, 0)),
                pl.BlockSpec((L, GR, GD), lambda i: (0, 0, 0)),
            ],
            out_specs=pl.BlockSpec((GR, T), lambda i: (i, 0)),
        ),
        # TODO(synk): tile the time axis for very long T; a time tile needs a
        # max(dilations) halo per layer (or carried edge state), unnecessary
        # at WaveNet decoder sizes where a full (G*C, T) block fits VMEM.
        compiler_params=pltpu.CompilerParams(
            dimension_semantics=("parallel",),
            vmem_limit_bytes=vmem_limit),
    )(x2, a0, a1, wr)

    return out2.reshape(N, C_res, T)


def reference_decoder_block(x_nct, deconv_ws, res_ws, dilations):
    """Pure-JAX reference mirroring the PyTorch module (NCT layout)."""
    T = x_nct.shape[-1]
    out = x_nct
    for li, d in enumerate(dilations):
        h = jnp.maximum(out, 0.0)                              # (N, C, T)
        hs = jnp.pad(h, ((0, 0), (0, 0), (d, 0)))[:, :, :T]     # h[t-d]
        wdc = deconv_ws[li]                                    # (C_res, C_dil, 2)
        y = (jnp.einsum("nct,co->not", h, wdc[:, :, 0])
             + jnp.einsum("nct,co->not", hs, wdc[:, :, 1]))
        wrc = res_ws[li]                                       # (C_res, C_dil, 1)
        z = jnp.einsum("not,ro->nrt", jnp.maximum(y, 0.0), wrc[:, :, 0])
        out = z + out
    return out


if __name__ == "__main__":
    nb_layers = 3
    kernel_size = 2
    dilation_channels = 32
    residual_channels = 32
    dilations = [2 ** (nb_layers - i - 1) for i in range(nb_layers)]  # [4, 2, 1]

    key = jax.random.PRNGKey(0)
    keys = jax.random.split(key, 2 * nb_layers + 2)

    # Deterministic synthetic parameters (shapes match the nn.Module __init__).
    deconv_ws = []   # ConvTranspose1d weight: (in=residual, out=dilation, k)
    res_ws = []      # Conv1d weight:          (out=residual, in=dilation, 1)
    for li in range(nb_layers):
        deconv_ws.append(
            0.1 * jax.random.normal(
                keys[2 * li],
                (residual_channels, dilation_channels, kernel_size),
                dtype=jnp.float32))
        res_ws.append(
            0.1 * jax.random.normal(
                keys[2 * li + 1],
                (residual_channels, dilation_channels, 1),
                dtype=jnp.float32))

    # Main check: batch=4, T=128 -> group packing G=2 (block-diag weights),
    # grid of 2 blocks, and the lane-aligned roll+mask shift path.
    x_a = jax.random.normal(keys[-2], (4, residual_channels, 128), jnp.float32)
    out_a = jax.block_until_ready(
        decoder_block_pallas(x_a, deconv_ws, res_ws, dilations))
    ref_a = reference_decoder_block(x_a, deconv_ws, res_ws, dilations)
    np.testing.assert_allclose(np.asarray(out_a), np.asarray(ref_a),
                               rtol=1e-5, atol=1e-5)

    # Secondary check: batch=2, T=16 exercises the unaligned-shift fallback.
    x_b = jax.random.normal(keys[-1], (2, residual_channels, 16), jnp.float32)
    out_b = jax.block_until_ready(
        decoder_block_pallas(x_b, deconv_ws, res_ws, dilations))
    ref_b = reference_decoder_block(x_b, deconv_ws, res_ws, dilations)
    np.testing.assert_allclose(np.asarray(out_b), np.asarray(ref_b),
                               rtol=1e-5, atol=1e-5)

    print("KERNEL_OK")
</pallas_src>

<mosaic_0001>
module attributes {stable_mosaic.version = 11 : i64} {
  func.func @_decoder_block_kernel(%arg0: i32, %arg1: memref<64x128xf32, #tpu.memory_space<vmem>>, %arg2: memref<3x64x64xf32, #tpu.memory_space<vmem>>, %arg3: memref<3x64x64xf32, #tpu.memory_space<vmem>>, %arg4: memref<3x64x64xf32, #tpu.memory_space<vmem>>, %arg5: memref<64x128xf32, #tpu.memory_space<vmem>>) attributes {dimension_semantics = [#tpu.dimension_semantics<parallel>], iteration_bounds = array<i64: 2>, scalar_prefetch = 0 : i64, scratch_operands = 0 : i64, tpu.core_type = #tpu.core_type<tc>, window_params = [{transform_indices = @transform_0, window_bounds = array<i64: 64, 128>}, {pipeline_mode = #tpu.pipeline_mode<synchronous>, transform_indices = @transform_1, window_bounds = array<i64: 3, 64, 64>}, {pipeline_mode = #tpu.pipeline_mode<synchronous>, transform_indices = @transform_2, window_bounds = array<i64: 3, 64, 64>}, {pipeline_mode = #tpu.pipeline_mode<synchronous>, transform_indices = @transform_3, window_bounds = array<i64: 3, 64, 64>}, {transform_indices = @transform_4, window_bounds = array<i64: 64, 128>}]} {
    %c0 = arith.constant 0 : index
    %c0_0 = arith.constant 0 : index
    %0 = vector.load %arg1[%c0, %c0_0] : memref<64x128xf32, #tpu.memory_space<vmem>>, vector<64x128xf32>
    %1 = tpu.iota {dimensions = array<i32: 1>} : vector<1x128xi32>
    %cst = arith.constant 0.000000e+00 : f32
    %2 = vector.broadcast %cst : f32 to vector<64x128xf32>
    %3 = arith.maximumf %0, %2 : vector<64x128xf32>
    %c4_i32 = arith.constant 4 : i32
    %4 = vector.broadcast %c4_i32 : i32 to vector<1x128xi32>
    %5 = arith.cmpi sge, %1, %4 : vector<1x128xi32>
    %c4_i32_1 = arith.constant 4 : i32
    %6 = tpu.dynamic_rotate %3 by %c4_i32_1 dim 1 : vector<64x128xf32>, i32 -> vector<64x128xf32>
    %cst_2 = arith.constant 0.000000e+00 : f32
    %7 = vector.shape_cast %5 : vector<1x128xi1> to vector<1x128xi1>
    %8 = vector.broadcast %7 : vector<1x128xi1> to vector<64x128xi1>
    %9 = vector.broadcast %cst_2 : f32 to vector<64x128xf32>
    %10 = arith.select %8, %6, %9 : vector<64x128xi1>, vector<64x128xf32>
    %c0_3 = arith.constant 0 : index
    %c0_4 = arith.constant 0 : index
    %c0_5 = arith.constant 0 : index
    %11 = vector.load %arg2[%c0_3, %c0_4, %c0_5] : memref<3x64x64xf32, #tpu.memory_space<vmem>>, vector<1x64x64xf32>
    %12 = vector.shape_cast %11 : vector<1x64x64xf32> to vector<64x64xf32>
    %cst_6 = arith.constant dense<0.000000e+00> : vector<64x128xf32>
    %13 = tpu.matmul %12, %3, %cst_6 {dimension_numbers = #tpu.dot_dimension_numbers<[1], [0], [0], [1], [0, 0, 1, 1], [], []>} : vector<64x64xf32>, vector<64x128xf32>, vector<64x128xf32> -> vector<64x128xf32>
    %c0_7 = arith.constant 0 : index
    %c0_8 = arith.constant 0 : index
    %c0_9 = arith.constant 0 : index
    %14 = vector.load %arg3[%c0_7, %c0_8, %c0_9] : memref<3x64x64xf32, #tpu.memory_space<vmem>>, vector<1x64x64xf32>
    %15 = vector.shape_cast %14 : vector<1x64x64xf32> to vector<64x64xf32>
    %cst_10 = arith.constant dense<0.000000e+00> : vector<64x128xf32>
    %16 = tpu.matmul %15, %10, %cst_10 {dimension_numbers = #tpu.dot_dimension_numbers<[1], [0], [0], [1], [0, 0, 1, 1], [], []>} : vector<64x64xf32>, vector<64x128xf32>, vector<64x128xf32> -> vector<64x128xf32>
    %17 = arith.addf %13, %16 : vector<64x128xf32>
    %c0_11 = arith.constant 0 : index
    %c0_12 = arith.constant 0 : index
    %c0_13 = arith.constant 0 : index
    %18 = vector.load %arg4[%c0_11, %c0_12, %c0_13] : memref<3x64x64xf32, #tpu.memory_space<vmem>>, vector<1x64x64xf32>
    %19 = vector.shape_cast %18 : vector<1x64x64xf32> to vector<64x64xf32>
    %cst_14 = arith.constant 0.000000e+00 : f32
    %20 = vector.broadcast %cst_14 : f32 to vector<64x128xf32>
    %21 = arith.maximumf %17, %20 : vector<64x128xf32>
    %cst_15 = arith.constant dense<0.000000e+00> : vector<64x128xf32>
    %22 = tpu.matmul %19, %21, %cst_15 {dimension_numbers = #tpu.dot_dimension_numbers<[1], [0], [0], [1], [0, 0, 1, 1], [], []>} : vector<64x64xf32>, vector<64x128xf32>, vector<64x128xf32> -> vector<64x128xf32>
    %23 = arith.addf %0, %22 : vector<64x128xf32>
    %cst_16 = arith.constant 0.000000e+00 : f32
    %24 = vector.broadcast %cst_16 : f32 to vector<64x128xf32>
    %25 = arith.maximumf %23, %24 : vector<64x128xf32>
    %c2_i32 = arith.constant 2 : i32
    %26 = vector.broadcast %c2_i32 : i32 to vector<1x128xi32>
    %27 = arith.cmpi sge, %1, %26 : vector<1x128xi32>
    %c2_i32_17 = arith.constant 2 : i32
    %28 = tpu.dynamic_rotate %25 by %c2_i32_17 dim 1 : vector<64x128xf32>, i32 -> vector<64x128xf32>
    %cst_18 = arith.constant 0.000000e+00 : f32
    %29 = vector.shape_cast %27 : vector<1x128xi1> to vector<1x128xi1>
    %30 = vector.broadcast %29 : vector<1x128xi1> to vector<64x128xi1>
    %31 = vector.broadcast %cst_18 : f32 to vector<64x128xf32>
    %32 = arith.select %30, %28, %31 : vector<64x128xi1>, vector<64x128xf32>
    %c1 = arith.constant 1 : index
    %c0_19 = arith.constant 0 : index
    %c0_20 = arith.constant 0 : index
    %33 = vector.load %arg2[%c1, %c0_19, %c0_20] : memref<3x64x64xf32, #tpu.memory_space<vmem>>, vector<1x64x64xf32>
    %34 = vector.shape_cast %33 : vector<1x64x64xf32> to vector<64x64xf32>
    %cst_21 = arith.constant dense<0.000000e+00> : vector<64x128xf32>
    %35 = tpu.matmul %34, %25, %cst_21 {dimension_numbers = #tpu.dot_dimension_numbers<[1], [0], [0], [1], [0, 0, 1, 1], [], []>} : vector<64x64xf32>, vector<64x128xf32>, vector<64x128xf32> -> vector<64x128xf32>
    %c1_22 = arith.constant 1 : index
    %c0_23 = arith.constant 0 : index
    %c0_24 = arith.constant 0 : index
    %36 = vector.load %arg3[%c1_22, %c0_23, %c0_24] : memref<3x64x64xf32, #tpu.memory_space<vmem>>, vector<1x64x64xf32>
    %37 = vector.shape_cast %36 : vector<1x64x64xf32> to vector<64x64xf32>
    %cst_25 = arith.constant dense<0.000000e+00> : vector<64x128xf32>
    %38 = tpu.matmul %37, %32, %cst_25 {dimension_numbers = #tpu.dot_dimension_numbers<[1], [0], [0], [1], [0, 0, 1, 1], [], []>} : vector<64x64xf32>, vector<64x128xf32>, vector<64x128xf32> -> vector<64x128xf32>
    %39 = arith.addf %35, %38 : vector<64x128xf32>
    %c1_26 = arith.constant 1 : index
    %c0_27 = arith.constant 0 : index
    %c0_28 = arith.constant 0 : index
    %40 = vector.load %arg4[%c1_26, %c0_27, %c0_28] : memref<3x64x64xf32, #tpu.memory_space<vmem>>, vector<1x64x64xf32>
    %41 = vector.shape_cast %40 : vector<1x64x64xf32> to vector<64x64xf32>
    %cst_29 = arith.constant 0.000000e+00 : f32
    %42 = vector.broadcast %cst_29 : f32 to vector<64x128xf32>
    %43 = arith.maximumf %39, %42 : vector<64x128xf32>
    %cst_30 = arith.constant dense<0.000000e+00> : vector<64x128xf32>
    %44 = tpu.matmul %41, %43, %cst_30 {dimension_numbers = #tpu.dot_dimension_numbers<[1], [0], [0], [1], [0, 0, 1, 1], [], []>} : vector<64x64xf32>, vector<64x128xf32>, vector<64x128xf32> -> vector<64x128xf32>
    %45 = arith.addf %23, %44 : vector<64x128xf32>
    %cst_31 = arith.constant 0.000000e+00 : f32
    %46 = vector.broadcast %cst_31 : f32 to vector<64x128xf32>
    %47 = arith.maximumf %45, %46 : vector<64x128xf32>
    %c1_i32 = arith.constant 1 : i32
    %48 = vector.broadcast %c1_i32 : i32 to vector<1x128xi32>
    %49 = arith.cmpi sge, %1, %48 : vector<1x128xi32>
    %c1_i32_32 = arith.constant 1 : i32
    %50 = tpu.dynamic_rotate %47 by %c1_i32_32 dim 1 : vector<64x128xf32>, i32 -> vector<64x128xf32>
    %cst_33 = arith.constant 0.000000e+00 : f32
    %51 = vector.shape_cast %49 : vector<1x128xi1> to vector<1x128xi1>
    %52 = vector.broadcast %51 : vector<1x128xi1> to vector<64x128xi1>
    %53 = vector.broadcast %cst_33 : f32 to vector<64x128xf32>
    %54 = arith.select %52, %50, %53 : vector<64x128xi1>, vector<64x128xf32>
    %c2 = arith.constant 2 : index
    %c0_34 = arith.constant 0 : index
    %c0_35 = arith.constant 0 : index
    %55 = vector.load %arg2[%c2, %c0_34, %c0_35] : memref<3x64x64xf32, #tpu.memory_space<vmem>>, vector<1x64x64xf32>
    %56 = vector.shape_cast %55 : vector<1x64x64xf32> to vector<64x64xf32>
    %cst_36 = arith.constant dense<0.000000e+00> : vector<64x128xf32>
    %57 = tpu.matmul %56, %47, %cst_36 {dimension_numbers = #tpu.dot_dimension_numbers<[1], [0], [0], [1], [0, 0, 1, 1], [], []>} : vector<64x64xf32>, vector<64x128xf32>, vector<64x128xf32> -> vector<64x128xf32>
    %c2_37 = arith.constant 2 : index
    %c0_38 = arith.constant 0 : index
    %c0_39 = arith.constant 0 : index
    %58 = vector.load %arg3[%c2_37, %c0_38, %c0_39] : memref<3x64x64xf32, #tpu.memory_space<vmem>>, vector<1x64x64xf32>
    %59 = vector.shape_cast %58 : vector<1x64x64xf32> to vector<64x64xf32>
    %cst_40 = arith.constant dense<0.000000e+00> : vector<64x128xf32>
    %60 = tpu.matmul %59, %54, %cst_40 {dimension_numbers = #tpu.dot_dimension_numbers<[1], [0], [0], [1], [0, 0, 1, 1], [], []>} : vector<64x64xf32>, vector<64x128xf32>, vector<64x128xf32> -> vector<64x128xf32>
    %61 = arith.addf %57, %60 : vector<64x128xf32>
    %c2_41 = arith.constant 2 : index
    %c0_42 = arith.constant 0 : index
    %c0_43 = arith.constant 0 : index
    %62 = vector.load %arg4[%c2_41, %c0_42, %c0_43] : memref<3x64x64xf32, #tpu.memory_space<vmem>>, vector<1x64x64xf32>
    %63 = vector.shape_cast %62 : vector<1x64x64xf32> to vector<64x64xf32>
    %cst_44 = arith.constant 0.000000e+00 : f32
    %64 = vector.broadcast %cst_44 : f32 to vector<64x128xf32>
    %65 = arith.maximumf %61, %64 : vector<64x128xf32>
    %cst_45 = arith.constant dense<0.000000e+00> : vector<64x128xf32>
    %66 = tpu.matmul %63, %65, %cst_45 {dimension_numbers = #tpu.dot_dimension_numbers<[1], [0], [0], [1], [0, 0, 1, 1], [], []>} : vector<64x64xf32>, vector<64x128xf32>, vector<64x128xf32> -> vector<64x128xf32>
    %67 = arith.addf %45, %66 : vector<64x128xf32>
    %c0_46 = arith.constant 0 : index
    %c0_47 = arith.constant 0 : index
    %68 = vector.load %arg5[%c0_46, %c0_47] : memref<64x128xf32, #tpu.memory_space<vmem>>, vector<64x128xf32>
    tpu.vector_store %arg5[%c0_46, %c0_47], %67 {strides = array<i32>} : memref<64x128xf32, #tpu.memory_space<vmem>>, vector<64x128xf32>,
    return
  }
  func.func @transform_0(%arg0: i32) -> (i32, i32) {
    %c0_i32 = arith.constant 0 : i32
    %c0_i32_0 = arith.constant 0 : i32
    return %arg0, %c0_i32 : i32, i32
  }
  func.func @transform_1(%arg0: i32) -> (i32, i32, i32) {
    %c0_i32 = arith.constant 0 : i32
    %c0_i32_0 = arith.constant 0 : i32
    %c0_i32_1 = arith.constant 0 : i32
    %c0_i32_2 = arith.constant 0 : i32
    return %c0_i32, %c0_i32_0, %c0_i32_1 : i32, i32, i32
  }
  func.func @transform_2(%arg0: i32) -> (i32, i32, i32) {
    %c0_i32 = arith.constant 0 : i32
    %c0_i32_0 = arith.constant 0 : i32
    %c0_i32_1 = arith.constant 0 : i32
    %c0_i32_2 = arith.constant 0 : i32
    return %c0_i32, %c0_i32_0, %c0_i32_1 : i32, i32, i32
  }
  func.func @transform_3(%arg0: i32) -> (i32, i32, i32) {
    %c0_i32 = arith.constant 0 : i32
    %c0_i32_0 = arith.constant 0 : i32
    %c0_i32_1 = arith.constant 0 : i32
    %c0_i32_2 = arith.constant 0 : i32
    return %c0_i32, %c0_i32_0, %c0_i32_1 : i32, i32, i32
  }
  func.func @transform_4(%arg0: i32) -> (i32, i32) {
    %c0_i32 = arith.constant 0 : i32
    %c0_i32_0 = arith.constant 0 : i32
    return %arg0, %c0_i32 : i32, i32
  }
}

</mosaic_0001>

<bundles_post_ra>
// kernel: tpu_custom_call.1
= control target key start
LH: loop header
LB: loop body
LE: loop exit
PB: predicated region body
PF: predicated region fallthrough
CT: control target
= control target key end

     0   :  { %9 = vsyncpa [#allocation3], 0  ;;  %s2167_s0 = inlined_call_operand.hbm [shape: f32[128,128], index: 0, kind: input, shape index: {}]   ;;  %s2168_s1 = inlined_call_operand.hbm [shape: f32[3,64,64], index: 1, kind: input, shape index: {}]   ;;  %s2169_s2 = inlined_call_operand.hbm [shape: f32[3,64,64], index: 2, kind: input, shape index: {}]   ;;  %s2170_s3 = inlined_call_operand.hbm [shape: f32[3,64,64], index: 3, kind: input, shape index: {}]   ;;  %s2171_s4 = inlined_call_operand.hbm [shape: f32[128,128], index: 4, kind: output, shape index: {}]  }
   0x1   :  { %11 = vsyncpa [#allocation3 + $0x1], 0 }
   0x2   :  { %12 = vsyncpa [#allocation6], 0 }
   0x3   :  { %13 = vsyncpa [#allocation9], 0 }
   0x4   :  { %14 = vsyncpa [#allocation4], 0 }
   0x5   :  { %16 = vsyncpa [#allocation4 + $0x1], 0  ;;  %s1680_s15 = smov 0   ;;  %s1682_s16 = smov 0  }
   0x6   :  { %s1684_s17 = smov 0   ;;  %s1686_s18 = smov 0  }
   0x7 LB: > { %s1701_s19 = sadd.s32 4294967295, %s1643_s18   ;;  %s1223_s20 = sadd.s32 4294967294, %s1643_s18   ;;  %s1643_s18 = sphi %s1686_s18, %s2182_s18   ;;  %s1639_s17 = sphi %s1684_s17, %s2181_s17   ;;  %s1635_s16 = sphi %s1682_s16, %s2180_s16   ;;  %s1631_s15 = sphi %s1680_s15, %s2179_s15  }
   0x8   : > { %p42_p0 = scmp.ne.s32.totalorder %s1635_s16, %s1631_s15  ;;  %p43_p1 = scmp.eq.s32.totalorder %s1701_s19, 0 }
   0x9   : > { %p129_p2 = scmp.eq.s32.totalorder %s1701_s19, 1  ;;  %p135_p3 = scmp.eq.s32.totalorder %s1223_s20, 1 }
   0xa   : > { %p1710_p4 = por %p43_p1, %p42_p0  ;;  %p1224_p5 = scmp.ge.s32.totalorder %s1643_s18, 1 }
   0xb   : > { %p1715_p6 = por %p135_p3, %p42_p0  ;;  %p142_p7 = scmp.lt.s32.totalorder %s1643_s18, 3 }
   0xc   : > { %s153_s25 = sshll.u32 %s2168_s1, 4  ;;  %s1645_s27 = smov [#allocation5]   ;;  %s154_s25 = int_to_ptr.hbm [resolvable:$true] %s153_s25 }
   0xd   : > { %p1723_p8 = pnand %p1224_p5, %p142_p7  ;;  %s155_s28 = sshll.u32 %s1645_s27, 4  ;;  %s156_s28 = int_to_ptr.vmem [resolvable:$true] %s155_s28 }
   0xe   : > { %s167_s6 = sshll.u32 %s2169_s2, 4  ;;  %s1646_s7 = smov 128   ;;  %s168_s6 = int_to_ptr.hbm [resolvable:$true] %s167_s6 }
   0xf   : > { %p1381_p9 = pneg %p1723_p8  ;;  %s1647_s8 = smov 8  }
  0x10   : > { %s1648_s9 = smov [#allocation7]   ;;  %s181_s13 = sshll.u32 %s2170_s3, 4  ;;  %s182_s13 = int_to_ptr.hbm [resolvable:$true] %s181_s13 }
  0x11   : > { %p1731_p10 = pnand %p1381_p9, %p43_p1  ;;  %s169_s10 = sshll.u32 %s1648_s9, 4  ;;  %s170_s10 = int_to_ptr.vmem [resolvable:$true] %s169_s10 }
  0x12   : > { %s1649_s14 = smov [#allocation8]   ;;  %s1753_s23 = sadd.s32 1, %s1643_s18  }
  0x13   : > { %1384 = dma.hbm_to_vmem [thread:$0]  (!%p1731_p10), %s154_s25, 3072, %s156_s28, [#allocation6], %s1646_s7, %s1646_s7, %s1647_s8  }
  0x14   : > { %1387 = dma.hbm_to_vmem [thread:$0]  (!%p1731_p10), %s168_s6, 3072, %s170_s10, [#allocation6], %s1646_s7, %s1646_s7, %s1647_s8  }
  0x15   : > { %s183_s20 = sshll.u32 %s1649_s14, 4  ;;  %s26_s24 = ssub.s32 %s1643_s18, %s1753_s23  ;;  %s184_s20 = int_to_ptr.vmem [resolvable:$true] %s183_s20 }
  0x16   : > { %1390 = dma.hbm_to_vmem [thread:$0]  (!%p1731_p10), %s182_s13, 3072, %s184_s20, [#allocation9], %s1646_s7, %s1646_s7, %s1647_s8  }
  0x17   : > { %s29_s25 = sadd.s32 1, %s1639_s17  ;;  %p27_p12 = scmp.eq.s32.totalorder %s26_s24, 0 }
  0x18   : > { %p36_p13 = scmp.ne.s32.totalorder %s1639_s17, %s1635_s16  ;;  %p37_p0 = scmp.eq.s32.totalorder %s1643_s18, 0 }
  0x19   : > { %s1767_s27 = scalar_select %p27_p12, %s1639_s17, %s29_s25  }
  0x1a   : > { %p1771_p3 = por %p129_p2, %p36_p13  ;;  %p1402_p5 = scmp.lt.s32.totalorder %s1643_s18, 2 }
  0x1b   : > { %s197_s30 = sand.u32 1, %s1639_s17   ;;  %s1339_s29 = sshll.u32 %s1643_s18, 6 }
  0x1c   : > { %p38_p7 = por %p37_p0, %p36_p13  ;;  %s1229_s5 = sshll.u32 %s197_s30, 6 }
  0x1d   : > { %s206_s10 = scalar_lea.hbm %s2167_s0, %s1339_s29  ;;  %s201_s12 = scalar_lea.vmem [#allocation2], %s1229_s5 }
  0x1e   : > { %s207_s11 = sshll.u32 %s206_s10, 4  ;;  %s209_s13 = sshll.u32 %s201_s12, 4  ;;  %s208_s11 = int_to_ptr.hbm [resolvable:$true] %s207_s11  ;;  %s210_s13 = int_to_ptr.vmem [resolvable:$true] %s209_s13 }
  0x1f   : > { %p1781_p9 = pnand %p1402_p5, %p38_p7  ;;  %s198_s20 = scalar_lea.sflag [#allocation3], %s197_s30 }
  0x20   : > { %s1539_s24 = sshra.s32 %s208_s11, 4  ;;  %s1546_s5 = scalar_lea.hbm %s2167_s0, 128  ;;  %s1540_s24 = int_to_ptr.hbm [resolvable:$true] %s1539_s24 }
  0x21   : > { %s1541_s25 = scalar_lea.hbm %s1540_s24, 64  ;;  %p1543_p10 = pneg %p1781_p9 }
  0x22   : > { %p1542_p2 = scmp.ne.s32.totalorder %s1540_s24, %s1541_s25  ;;  %p1547_p0 = scmp.lt.s32.totalorder %s1540_s24, %s2167_s0 }
  0x23   : > { %p1548_p5 = scmp.lt.s32.totalorder %s1546_s5, %s1541_s25 }
  0x24   : > { %p1544_p12 = pnand %p1543_p10, %p1542_p2 }
  0x25   : > { %p1549_p7 = por %p1548_p5, %p1547_p0 }
  0x26   : > { %p1545_p13 = pneg %p1544_p12 }
  0x28   : > { %p1550_p11 = pnand %p1549_p7, %p1545_p13 }
  0x2a   : > { %1553 = shalt.err (!%p1550_p11)
}
  0x2b   : > { %1394 = dma.hbm_to_vmem [thread:$0]  (!%p1781_p9), %s208_s11, 1024, %s210_s13, %s198_s20, %s1646_s7, %s1646_s7, %s1647_s8  }
  0x2c   : > { %221 = sbr.rel (%p1723_p8) target bundleno = 1649 (0x671), region = 36  ;;  %s1801_s30 = sand.u32 (!%p1723_p8), 1, %s1635_s16  }
  0x2d   : > { %s1233_s12 = sshll.u32 (!%p1723_p8), %s1801_s30, 6  ;;  %s224_s24 = scalar_lea.sflag (!%p1723_p8), [#allocation3], %s1801_s30 }
  0x2e   : > { %s227_s25 = scalar_lea.vmem (!%p1723_p8), [#allocation2], %s1233_s12 }
  0x31   : > { %1614 = dma.done.wait (%p1710_p4), %s224_s24, 1024  }
  0x32   : > { %1616 = vsyncadd (%p1710_p4), %s224_s24, 4294966272 }
  0x33   : > { %1618 = dma.done.wait (%p43_p1), [#allocation6], 6144  }
  0x34   : > { %1620 = vsyncadd (%p43_p1), [#allocation6], 4294961152 }
  0x35   : > { %1622 = dma.done.wait (%p43_p1), [#allocation9], 3072  }
  0x36   : > { %1624 = vsyncadd (%p43_p1), [#allocation9], 4294964224  ;;  %v1819_v0 = vld [vmem:[%s227_s25 + $0x38] sm:$0xff]  ;;  %v1821_v1 = vld [vmem:[%s227_s25 + $0x28] sm:$0xff]  ;;  %s1650_s21 = smov 4   ;;  %v278_v16 = vlaneseq  ;;  %vm331_vm1 = vcmask 523264  }
  0x37   : > { %v287_v2 = vmax.f32 %v1819_v0, 0.0  ;;  %v285_v3 = vmax.f32 %v1821_v1, 0.0  ;;  %v1825_v4 = vld [vmem:[%s227_s25 + $0x18] sm:$0xff]  ;;  %v1832_v6 = vld [vmem:[%s227_s25 + $0x30] sm:$0xff]  ;;  %v1834_v7 = vld [vmem:[%s227_s25 + $0x20] sm:$0xff]  ;;  %s1651_s26 = smov 2  }
  0x38   : > { %v283_v5 = vmax.f32 %v1825_v4, 0.0  ;;  %v1838_v8 = vld [vmem:[%s227_s25 + $0x10] sm:$0xff]  ;;  %v286_v9 = vmax.f32 %v1832_v6, 0.0  ;;  %v284_v10 = vmax.f32 %v1834_v7, 0.0  ;;  %v1845_v12 = vld [vmem:[%s227_s25 + $0x8] sm:$0xff]  ;;  %v1847_v13 = vld [vmem:[%s227_s25] sm:$0xff] }
  0x39   : > { %303 = vrot.lane.b32.xlu0 %v287_v2, %s1650_s21  ;;  %299 = vrot.lane.b32.xlu1 %v285_v3, %s1650_s21  ;;  %v282_v11 = vmax.f32 %v1838_v8, 0.0  ;;  %v281_v14 = vmax.f32 %v1845_v12, 0.0  ;;  %v280_v15 = vmax.f32 %v1847_v13, 0.0  ;;  %v1857_v17 = vand.u32 127, %v278_v16  ;;  %v325_v26 = vld [vmem:[#allocation7 + $0x10] sm:$0xff]  ;;  %v323_v27 = vld [vmem:[#allocation7] sm:$0xff] }
  0x3a   : > { %295 = vrot.lane.b32.xlu2 %v283_v5, %s1650_s21  ;;  %v326_v28 = vld [vmem:[#allocation7 + $0x18] sm:$0xff]  ;;  %v324_v29 = vld [vmem:[#allocation7 + $0x8] sm:$0xff]  ;;  %v327_v30 = vld [vmem:[#allocation7 + $0x20] sm:$0xff]  ;;  %s1652_s7 = smov 1   ;;  %s267_s8 = scalar_lea.vmem [#allocation10], %s1233_s12 }
  0x3b   : > { %vm288_vm0 = vcmp.ge.s32.totalorder %v1857_v17, 4  ;;  %v315_v31 = vld [vmem:[#allocation5] sm:$0xff]  ;;  %v328_v32 = vld [vmem:[#allocation7 + $0x28] sm:$0xff]  ;;  %v329_v34 = vld [vmem:[#allocation7 + $0x30] sm:$0xff]  ;;  %vm559_vm2 = vcmp.ge.s32.totalorder %v1857_v17, 2  ;;  %vm832_vm3 = vcmp.ge.s32.totalorder %v1857_v17, 1 }
  0x3c   : > { %v316_v33 = vld [vmem:[#allocation5 + $0x8] sm:$0xff]  ;;  %v317_v35 = vld [vmem:[#allocation5 + $0x10] sm:$0xff]  ;;  %v330_v36 = vld [vmem:[#allocation7 + $0x38] sm:$0xff]  ;;  %s1340_s11 = sshll.u32 %s1701_s19, 6  ;;  %s1118_s29 = sshll.u32 %s267_s8, 4  ;;  %s1119_s29 = int_to_ptr.vmem [resolvable:$true] %s1118_s29 }
  0x3d   : > { %v318_v37 = vld [vmem:[#allocation5 + $0x18] sm:$0xff]  ;;  %v319_v38 = vld [vmem:[#allocation5 + $0x20] sm:$0xff]  ;;  %v320_v39 = vld [vmem:[#allocation5 + $0x28] sm:$0xff]  ;;  %s1117_s20 = scalar_lea.hbm %s2171_s4, %s1340_s11  ;;  %s1106_s5 = scalar_lea.sflag [#allocation4], %s1801_s30 }
  0x3e   : > { %v321_v40 = vld [vmem:[#allocation5 + $0x30] sm:$0xff]  ;;  %v322_v41 = vld [vmem:[#allocation5 + $0x38] sm:$0xff]  ;;  %s1120_s6 = sshll.u32 %s1117_s20, 4  ;;  %s1589_s24 = scalar_lea.hbm %s2171_s4, 128  ;;  %s1121_s6 = int_to_ptr.hbm [resolvable:$true] %s1120_s6 }
  0x3f   : > { %v867_v17 = vld [vmem:[#allocation5 + $0xb8] sm:$0xff]  ;;  %s1583_s9 = sshra.s32 %s1121_s6, 4  ;;  %s1584_s9 = int_to_ptr.hbm [resolvable:$true] %s1583_s9 }
  0x40   : > { %s1585_s19 = scalar_lea.hbm %s1584_s9, 64  ;;  %p1590_p11 = scmp.lt.s32.totalorder %s1584_s9, %s2171_s4 }
  0x41   : > { %301 = vrot.lane.b32.xlu0 %v286_v9, %s1650_s21  ;;  %297 = vrot.lane.b32.xlu1 %v284_v10, %s1650_s21  ;;  %p1586_p1 = scmp.ne.s32.totalorder %s1584_s9, %s1585_s19  ;;  %p1591_p9 = scmp.lt.s32.totalorder %s1589_s24, %s1585_s19 }
  0x42   : > { %293 = vrot.lane.b32.xlu2 %v282_v11, %s1650_s21 }
  0x43   : > { %p1587_p4 = pnand %p1586_p1, %p1771_p3  ;;  %p1592_p2 = por %p1591_p9, %p1590_p11 }
  0x45   : > { %p1588_p8 = pneg %p1587_p4 }
  0x47   : > { %p1593_p10 = pnand %p1592_p2, %p1588_p8 }
  0x49   : > { %291 = vrot.lane.b32.xlu0 %v281_v14, %s1650_s21  ;;  %289 = vrot.lane.b32.xlu1 %v280_v15, %s1650_s21 }
  0x94   : > { %v296_v20 = vpop.permute.xlu2 %295 }
  0x9c   : > { %v294_v23 = vpop.permute.xlu2 %293 }
  0xab   : > { %v304_v18 = vpop.permute.xlu0 %303  ;;  %v300_v19 = vpop.permute.xlu1 %299 }
  0xac   : > { %1238 = vmatpush.msk.msra.mxu0 %vm288_vm0, %v304_v18  ;;  %1341 = vmatpush.msk.msra.mxu1 %vm288_vm0, %v304_v18 }
  0xad   : > { %1342 = vmatpush.msk.msra.mxu2 %vm288_vm0, %v304_v18  ;;  %1343 = vmatpush.msk.msra.mxu3 %vm288_vm0, %v304_v18 }
  0xb3   : > { %v302_v21 = vpop.permute.xlu0 %301  ;;  %v298_v22 = vpop.permute.xlu1 %297 }
  0xb4   : > { %1239 = vmatpush.msk.msra.mxu0 %vm288_vm0, %v302_v21  ;;  %1344 = vmatpush.msk.msra.mxu1 %vm288_vm0, %v302_v21 }
  0xb5   : > { %1345 = vmatpush.msk.msra.mxu2 %vm288_vm0, %v302_v21  ;;  %1346 = vmatpush.msk.msra.mxu3 %vm288_vm0, %v302_v21  ;;  %v464_v21 = vld [vmem:[#allocation8 + $0x10] sm:$0xff] }
  0xb6   : > { %1240 = vmatpush.msk.msra.mxu0 %vm288_vm0, %v300_v19  ;;  %1347 = vmatpush.msk.msra.mxu1 %vm288_vm0, %v300_v19 }
  0xb7   : > { %1348 = vmatpush.msk.msra.mxu2 %vm288_vm0, %v300_v19  ;;  %1349 = vmatpush.msk.msra.mxu3 %vm288_vm0, %v300_v19  ;;  %v462_v19 = vld [vmem:[#allocation8] sm:$0xff] }
  0xb8   : > { %1241 = vmatpush.msk.msra.mxu0 %vm288_vm0, %v298_v22  ;;  %1350 = vmatpush.msk.msra.mxu1 %vm288_vm0, %v298_v22 }
  0xb9   : > { %1351 = vmatpush.msk.msra.mxu2 %vm288_vm0, %v298_v22  ;;  %1352 = vmatpush.msk.msra.mxu3 %vm288_vm0, %v298_v22  ;;  %v465_v22 = vld [vmem:[#allocation8 + $0x18] sm:$0xff] }
  0xba   : > { %1242 = vmatpush.msk.msra.mxu0 %vm288_vm0, %v296_v20  ;;  %1353 = vmatpush.msk.msra.mxu1 %vm288_vm0, %v296_v20 }
  0xbb   : > { %1354 = vmatpush.msk.msra.mxu2 %vm288_vm0, %v296_v20  ;;  %1355 = vmatpush.msk.msra.mxu3 %vm288_vm0, %v296_v20  ;;  %v292_v24 = vpop.permute.xlu0 %291  ;;  %v290_v25 = vpop.permute.xlu1 %289  ;;  %v463_v20 = vld [vmem:[#allocation8 + $0x8] sm:$0xff] }
  0xbc   : > { %1243 = vmatpush.msk.msra.mxu0 %vm288_vm0, %v294_v23  ;;  %1356 = vmatpush.msk.msra.mxu1 %vm288_vm0, %v294_v23 }
  0xbd   : > { %1357 = vmatpush.msk.msra.mxu2 %vm288_vm0, %v294_v23  ;;  %1358 = vmatpush.msk.msra.mxu3 %vm288_vm0, %v294_v23  ;;  %v466_v23 = vld [vmem:[#allocation8 + $0x20] sm:$0xff] }
  0xbe   : > { %1244 = vmatpush.msk.msra.mxu0 %vm288_vm0, %v292_v24  ;;  %1359 = vmatpush.msk.msra.mxu1 %vm288_vm0, %v292_v24 }
  0xbf   : > { %1360 = vmatpush.msk.msra.mxu2 %vm288_vm0, %v292_v24  ;;  %1361 = vmatpush.msk.msra.mxu3 %vm288_vm0, %v292_v24  ;;  %v467_v24 = vld [vmem:[#allocation8 + $0x28] sm:$0xff] }
  0xc0   : > { %1245 = vmatpush.msk.msra.mxu0 %vm288_vm0, %v290_v25  ;;  %1362 = vmatpush.msk.msra.mxu1 %vm288_vm0, %v290_v25 }
  0xc1   : > { %1363 = vmatpush.msk.msra.mxu2 %vm288_vm0, %v290_v25  ;;  %1364 = vmatpush.msk.msra.mxu3 %vm288_vm0, %v290_v25  ;;  %v468_v25 = vld [vmem:[#allocation8 + $0x30] sm:$0xff] }
  0xc2   : > { %1248 = vmatmul.msk.f32.vlgmr.msra.gmra.mxu1 %vm331_vm1, %v325_v26  ;;  %1246 = vmatmul.msk.f32.vlgmr.msra.gmra.mxu0 %vm331_vm1, %v323_v27  ;;  %v469_v26 = vld [vmem:[#allocation8 + $0x38] sm:$0xff] }
  0xc3   : > { %429 = vmatpush.msrb.mxu1 %v287_v2  ;;  %1250 = vmatmul.msk.f32.vlgmr.msra.gmra.mxu2 %vm331_vm1, %v327_v30 }
  0xc4   : > { %1252 = vmatmul.msk.f32.vlgmr.msra.gmra.mxu3 %vm331_vm1, %v329_v34 }
  0xc5   : > { %430 = vmatpush.msrb.mxu1 %v286_v9 }
  0xc7   : > { %431 = vmatpush.msrb.mxu1 %v285_v3 }
  0xc9   : > { %432 = vmatpush.msrb.mxu1 %v284_v10 }
  0xca   : > { %1249 = vmatmul.msk.f32.gmra.mxu1 %vm331_vm1, %v326_v28  ;;  %1247 = vmatmul.msk.f32.gmra.mxu0 %vm331_vm1, %v324_v29 }
  0xcb   : > { %433 = vmatpush.msrb.mxu1 %v283_v5  ;;  %1251 = vmatmul.msk.f32.gmra.mxu2 %vm331_vm1, %v328_v32 }
  0xcc   : > { %1253 = vmatmul.msk.f32.gmra.mxu3 %vm331_vm1, %v330_v36 }
  0xcd   : > { %434 = vmatpush.msrb.mxu1 %v282_v11 }
  0xcf   : > { %435 = vmatpush.msrb.mxu1 %v281_v14 }
  0xd1   : > { %436 = vmatpush.msrb.mxu1 %v280_v15 }
  0xd2   : > { %1254 = vmatmul.msk.f32.vlgmr.msrb.gmra.mxu1 %vm331_vm1, %v315_v31 }
  0xda   : > { %1255 = vmatmul.msk.f32.gmra.mxu1 %vm331_vm1, %v316_v33 }
  0xe2   : > { %1256 = vmatmul.msk.f32.gmra.mxu1 %vm331_vm1, %v317_v35 }
  0xea   : > { %1257 = vmatmul.msk.f32.gmra.mxu1 %vm331_vm1, %v318_v37 }
  0xf2   : > { %1258 = vmatmul.msk.f32.gmra.mxu1 %vm331_vm1, %v319_v38 }
  0xfa   : > { %1259 = vmatmul.msk.f32.gmra.mxu1 %vm331_vm1, %v320_v39 }
 0x102   : > { %1260 = vmatmul.msk.f32.gmra.mxu1 %vm331_vm1, %v321_v40 }
 0x10a   : > { %1261 = vmatmul.msk.f32.gmra.mxu1 %vm331_vm1, %v322_v41 }
 0x13f   : > { %v379_v42 = vpop.f32.mrf.mxu1  ;;  %v373_v53 = vpop.f32.mrf.mxu0 }
 0x146   : > { %v385_v51 = vpop.f32.mrf.mxu2 }
 0x147   : > { %v382_v43 = vpop.f32.mrf.mxu1  ;;  %v391_v50 = vpop.f32.mrf.mxu3 }
 0x148   : > { %v376_v3 = vpop.f32.mrf.mxu0 }
 0x14e   : > { %v388_v55 = vpop.f32.mrf.mxu2 }
 0x14f   : > { %v438_v44 = vpop.f32.mrf.mxu1  ;;  %v394_v54 = vpop.f32.mrf.mxu3 }
 0x150   : > { %v439_v14 = vadd.f32 %v438_v44, %v373_v53 }
 0x152   : > { %v470_v18 = vmax.f32 %v439_v14, 0.0 }
 0x157   : > { %v441_v45 = vpop.f32.mrf.mxu1 }
 0x158   : > { %v442_v10 = vadd.f32 %v441_v45, %v376_v3  ;;  %v588_v45 = vld [vmem:[#allocation5 + $0x48] sm:$0xff]  ;;  %v602_v3 = vld [vmem:[#allocation7 + $0x70] sm:$0xff] }
 0x15a   : > { %v471_v16 = vmax.f32 %v442_v10, 0.0 }
 0x15f   : > { %v444_v46 = vpop.f32.mrf.mxu1 }
 0x160   : > { %v445_v5 = vadd.f32 %v444_v46, %v379_v42 }
 0x162   : > { %v472_v15 = vmax.f32 %v445_v5, 0.0  ;;  %v603_v5 = vld [vmem:[#allocation7 + $0x78] sm:$0xff] }
 0x167   : > { %v447_v47 = vpop.f32.mrf.mxu1 }
 0x168   : > { %v448_v63 = vadd.f32 %v447_v47, %v382_v43 }
 0x16a   : > { %v473_v11 = vmax.f32 %v448_v63, 0.0  ;;  %v600_v63 = vld [vmem:[#allocation7 + $0x60] sm:$0xff] }
 0x16f   : > { %v450_v48 = vpop.f32.mrf.mxu1 }
 0x170   : > { %v451_v61 = vadd.f32 %v450_v48, %v385_v51 }
 0x172   : > { %v474_v9 = vmax.f32 %v451_v61, 0.0  ;;  %v599_v61 = vld [vmem:[#allocation7 + $0x58] sm:$0xff] }
 0x177   : > { %v453_v49 = vpop.f32.mrf.mxu1 }
 0x178   : > { %v454_v59 = vadd.f32 %v453_v49, %v388_v55  ;;  %v589_v49 = vld [vmem:[#allocation5 + $0x50] sm:$0xff] }
 0x17a   : > { %v475_v2 = vmax.f32 %v454_v59, 0.0  ;;  %v598_v59 = vld [vmem:[#allocation7 + $0x50] sm:$0xff] }
 0x17f   : > { %v456_v52 = vpop.f32.mrf.mxu1 }
 0x180   : > { %v457_v57 = vadd.f32 %v456_v52, %v391_v50  ;;  %v590_v52 = vld [vmem:[#allocation5 + $0x58] sm:$0xff] }
 0x182   : > { %v476_v62 = vmax.f32 %v457_v57, 0.0  ;;  %v597_v57 = vld [vmem:[#allocation7 + $0x48] sm:$0xff] }
 0x187   : > { %v459_v56 = vpop.f32.mrf.mxu1 }
 0x188   : > { %v460_v58 = vadd.f32 %v459_v56, %v394_v54  ;;  %v596_v54 = vld [vmem:[#allocation7 + $0x40] sm:$0xff] }
 0x189   : > { %v591_v56 = vld [vmem:[#allocation5 + $0x60] sm:$0xff] }
 0x18a   : > { %v477_v60 = vmax.f32 %v460_v58, 0.0  ;;  %v592_v58 = vld [vmem:[#allocation5 + $0x68] sm:$0xff] }
 0x18c   : > { %510 = vmatpush.msrb.mxu2 %v477_v60  ;;  %v593_v60 = vld [vmem:[#allocation5 + $0x70] sm:$0xff] }
 0x18e   : > { %511 = vmatpush.msrb.mxu2 %v476_v62  ;;  %v594_v62 = vld [vmem:[#allocation5 + $0x78] sm:$0xff] }
 0x190   : > { %512 = vmatpush.msrb.mxu2 %v475_v2  ;;  %v601_v2 = vld [vmem:[#allocation7 + $0x68] sm:$0xff] }
 0x192   : > { %513 = vmatpush.msrb.mxu2 %v474_v9 }
 0x194   : > { %514 = vmatpush.msrb.mxu2 %v473_v11 }
 0x196   : > { %515 = vmatpush.msrb.mxu2 %v472_v15 }
 0x198   : > { %516 = vmatpush.msrb.mxu2 %v471_v16 }
 0x19a   : > { %517 = vmatpush.msrb.mxu2 %v470_v18 }
 0x19b   : > { %1262 = vmatmul.msk.f32.vlgmr.msrb.gmra.mxu2 %vm331_vm1, %v462_v19 }
 0x1a3   : > { %1263 = vmatmul.msk.f32.gmra.mxu2 %vm331_vm1, %v463_v20 }
 0x1ab   : > { %1264 = vmatmul.msk.f32.gmra.mxu2 %vm331_vm1, %v464_v21 }
 0x1b3   : > { %1265 = vmatmul.msk.f32.gmra.mxu2 %vm331_vm1, %v465_v22 }
 0x1bb   : > { %1266 = vmatmul.msk.f32.gmra.mxu2 %vm331_vm1, %v466_v23 }
 0x1c3   : > { %1267 = vmatmul.msk.f32.gmra.mxu2 %vm331_vm1, %v467_v24 }
 0x1cb   : > { %1268 = vmatmul.msk.f32.gmra.mxu2 %vm331_vm1, %v468_v25 }
 0x1d3   : > { %1269 = vmatmul.msk.f32.gmra.mxu2 %vm331_vm1, %v469_v26 }
 0x21e   : > { %v519_v27 = vpop.f32.mrf.mxu2 }
 0x21f   : > { %v1991_v43 = vadd.f32 %v519_v27, %v1847_v13 }
 0x226   : > { %v522_v28 = vpop.f32.mrf.mxu2 }
 0x227   : > { %v1996_v44 = vadd.f32 %v522_v28, %v1845_v12  ;;  %v587_v12 = vld [vmem:[#allocation5 + $0x40] sm:$0xff] }
 0x22e   : > { %v525_v29 = vpop.f32.mrf.mxu2 }
 0x22f   : > { %v1968_v35 = vadd.f32 %v525_v29, %v1838_v8 }
 0x231   : > { %v553_v38 = vmax.f32 %v1968_v35, 0.0 }
 0x236   : > { %v528_v30 = vpop.f32.mrf.mxu2 }
 0x23e   : > { %v531_v31 = vpop.f32.mrf.mxu2 }
 0x23f   : > { %v1988_v42 = vadd.f32 %v531_v31, %v1834_v7  ;;  %v552_v7 = vmax.f32 %v1996_v44, 0.0 }
 0x246   : > { %v534_v32 = vpop.f32.mrf.mxu2 }
 0x247   : > { %v1963_v33 = vadd.f32 %v534_v32, %v1821_v1  ;;  %v1978_v1 = vadd.f32 %v528_v30, %v1825_v4  ;;  %v551_v4 = vmax.f32 %v1991_v43, 0.0 }
 0x249   : > { %v556_v34 = vmax.f32 %v1963_v33, 0.0  ;;  %v554_v8 = vmax.f32 %v1978_v1, 0.0 }
 0x24b   : > { %570 = vrot.lane.b32.xlu1 %v556_v34, %s1651_s26 }
 0x24e   : > { %v537_v36 = vpop.f32.mrf.mxu2 }
 0x24f   : > { %v1971_v37 = vadd.f32 %v537_v36, %v1832_v6 }
 0x251   : > { %v557_v39 = vmax.f32 %v1971_v37, 0.0 }
 0x253   : > { %564 = vrot.lane.b32.xlu1 %v553_v38, %s1651_s26  ;;  %572 = vrot.lane.b32.xlu0 %v557_v39, %s1651_s26 }
 0x256   : > { %v540_v40 = vpop.f32.mrf.mxu2 }
 0x257   : > { %v1981_v41 = vadd.f32 %v540_v40, %v1819_v0  ;;  %v555_v0 = vmax.f32 %v1988_v42, 0.0 }
 0x259   : > { %v558_v6 = vmax.f32 %v1981_v41, 0.0 }
 0x25b   : > { %566 = vrot.lane.b32.xlu0 %v554_v8, %s1651_s26  ;;  %574 = vrot.lane.b32.xlu2 %v558_v6, %s1651_s26 }
 0x25c   : > { %701 = vmatpush.msrb.mxu0 %v558_v6 }
 0x25e   : > { %702 = vmatpush.msrb.mxu0 %v557_v39 }
 0x260   : > { %703 = vmatpush.msrb.mxu0 %v556_v34 }
 0x262   : > { %704 = vmatpush.msrb.mxu0 %v555_v0 }
 0x263   : > { %560 = vrot.lane.b32.xlu0 %v551_v4, %s1651_s26  ;;  %568 = vrot.lane.b32.xlu2 %v555_v0, %s1651_s26 }
 0x264   : > { %705 = vmatpush.msrb.mxu0 %v554_v8 }
 0x266   : > { %706 = vmatpush.msrb.mxu0 %v553_v38 }
 0x268   : > { %707 = vmatpush.msrb.mxu0 %v552_v7 }
 0x26a   : > { %708 = vmatpush.msrb.mxu0 %v551_v4 }
 0x26b   : > { %562 = vrot.lane.b32.xlu2 %v552_v7, %s1651_s26  ;;  %1286 = vmatmul.msk.f32.vlgmr.msrb.gmra.mxu0 %vm331_vm1, %v587_v12  ;;  %v735_v12 = vld [vmem:[#allocation8 + $0x40] sm:$0xff] }
 0x273   : > { %1287 = vmatmul.msk.f32.gmra.mxu0 %vm331_vm1, %v588_v45  ;;  %v736_v45 = vld [vmem:[#allocation8 + $0x48] sm:$0xff] }
 0x27b   : > { %1288 = vmatmul.msk.f32.gmra.mxu0 %vm331_vm1, %v589_v49  ;;  %v740_v49 = vld [vmem:[#allocation8 + $0x68] sm:$0xff] }
 0x283   : > { %1289 = vmatmul.msk.f32.gmra.mxu0 %vm331_vm1, %v590_v52 }
 0x28b   : > { %1290 = vmatmul.msk.f32.gmra.mxu0 %vm331_vm1, %v591_v56 }
 0x293   : > { %1291 = vmatmul.msk.f32.gmra.mxu0 %vm331_vm1, %v592_v58 }
 0x29b   : > { %1292 = vmatmul.msk.f32.gmra.mxu0 %vm331_vm1, %v593_v60 }
 0x2a3   : > { %1293 = vmatmul.msk.f32.gmra.mxu0 %vm331_vm1, %v594_v62 }
 0x2b5   : > { %v575_v13 = vpop.permute.xlu2 %574 }
 0x2b6   : > { %1270 = vmatpush.msk.msrb.mxu3 %vm559_vm2, %v575_v13 }
 0x2bd   : > { %v571_v46 = vpop.permute.xlu1 %570  ;;  %v569_v48 = vpop.permute.xlu2 %568 }
 0x2c5   : > { %v573_v47 = vpop.permute.xlu0 %572  ;;  %v565_v51 = vpop.permute.xlu1 %564 }
 0x2c6   : > { %1271 = vmatpush.msk.msrb.mxu3 %vm559_vm2, %v573_v47  ;;  %v563_v53 = vpop.permute.xlu2 %562  ;;  %v738_v47 = vld [vmem:[#allocation8 + $0x58] sm:$0xff] }
 0x2c8   : > { %1272 = vmatpush.msk.msrb.mxu3 %vm559_vm2, %v571_v46  ;;  %v737_v46 = vld [vmem:[#allocation8 + $0x50] sm:$0xff] }
 0x2ca   : > { %1273 = vmatpush.msk.msrb.mxu3 %vm559_vm2, %v569_v48  ;;  %v739_v48 = vld [vmem:[#allocation8 + $0x60] sm:$0xff] }
 0x2cd   : > { %v567_v50 = vpop.permute.xlu0 %566 }
 0x2ce   : > { %1274 = vmatpush.msk.msrb.mxu3 %vm559_vm2, %v567_v50  ;;  %v741_v50 = vld [vmem:[#allocation8 + $0x70] sm:$0xff] }
 0x2d0   : > { %1275 = vmatpush.msk.msrb.mxu3 %vm559_vm2, %v565_v51  ;;  %v742_v51 = vld [vmem:[#allocation8 + $0x78] sm:$0xff] }
 0x2d2   : > { %1276 = vmatpush.msk.msrb.mxu3 %vm559_vm2, %v563_v53 }
 0x2d5   : > { %v561_v55 = vpop.permute.xlu0 %560 }
 0x2d6   : > { %1277 = vmatpush.msk.msrb.mxu3 %vm559_vm2, %v561_v55 }
 0x2d7   : > { %1278 = vmatmul.msk.f32.vlgmr.msrb.gmra.mxu3 %vm331_vm1, %v596_v54 }
 0x2df   : > { %1279 = vmatmul.msk.f32.gmra.mxu3 %vm331_vm1, %v597_v57 }
 0x2e7   : > { %1280 = vmatmul.msk.f32.gmra.mxu3 %vm331_vm1, %v598_v59 }
 0x2e8   : > { %v710_v9 = vpop.f32.mrf.mxu0 }
 0x2ef   : > { %1281 = vmatmul.msk.f32.gmra.mxu3 %vm331_vm1, %v599_v61 }
 0x2f0   : > { %v713_v10 = vpop.f32.mrf.mxu0 }
 0x2f7   : > { %1282 = vmatmul.msk.f32.gmra.mxu3 %vm331_vm1, %v600_v63 }
 0x2f8   : > { %v716_v15 = vpop.f32.mrf.mxu0 }
 0x2ff   : > { %1283 = vmatmul.msk.f32.gmra.mxu3 %vm331_vm1, %v601_v2 }
 0x300   : > { %v719_v18 = vpop.f32.mrf.mxu0 }
 0x307   : > { %1284 = vmatmul.msk.f32.gmra.mxu3 %vm331_vm1, %v602_v3 }
 0x308   : > { %v722_v21 = vpop.f32.mrf.mxu0 }
 0x30f   : > { %1285 = vmatmul.msk.f32.gmra.mxu3 %vm331_vm1, %v603_v5 }
 0x310   : > { %v725_v23 = vpop.f32.mrf.mxu0 }
 0x318   : > { %v728_v25 = vpop.f32.mrf.mxu0 }
 0x320   : > { %v731_v27 = vpop.f32.mrf.mxu0 }
 0x35a   : > { %v645_v11 = vpop.f32.mrf.mxu3 }
 0x35b   : > { %v711_v14 = vadd.f32 %v710_v9, %v645_v11 }
 0x35d   : > { %v743_v13 = vmax.f32 %v711_v14, 0.0  ;;  %v861_v14 = vld [vmem:[#allocation5 + $0x88] sm:$0xff] }
 0x362   : > { %v648_v16 = vpop.f32.mrf.mxu3 }
 0x363   : > { %v714_v6 = vadd.f32 %v713_v10, %v648_v16 }
 0x365   : > { %v744_v7 = vmax.f32 %v714_v6, 0.0 }
 0x36a   : > { %v651_v19 = vpop.f32.mrf.mxu3 }
 0x36b   : > { %v717_v40 = vadd.f32 %v716_v15, %v651_v19 }
 0x36d   : > { %v745_v4 = vmax.f32 %v717_v40, 0.0 }
 0x372   : > { %v654_v20 = vpop.f32.mrf.mxu3 }
 0x373   : > { %v720_v38 = vadd.f32 %v719_v18, %v654_v20  ;;  %v862_v18 = vld [vmem:[#allocation5 + $0x90] sm:$0xff] }
 0x375   : > { %v746_v0 = vmax.f32 %v720_v38, 0.0  ;;  %v876_v38 = vld [vmem:[#allocation7 + $0xb8] sm:$0xff] }
 0x37a   : > { %v657_v22 = vpop.f32.mrf.mxu3 }
 0x37b   : > { %v723_v34 = vadd.f32 %v722_v21, %v657_v22  ;;  %v863_v22 = vld [vmem:[#allocation5 + $0x98] sm:$0xff] }
 0x37d   : > { %v747_v8 = vmax.f32 %v723_v34, 0.0  ;;  %v874_v34 = vld [vmem:[#allocation7 + $0xa8] sm:$0xff] }
 0x382   : > { %v660_v24 = vpop.f32.mrf.mxu3 }
 0x383   : > { %v726_v31 = vadd.f32 %v725_v23, %v660_v24  ;;  %v869_v24 = vld [vmem:[#allocation7 + $0x80] sm:$0xff] }
 0x385   : > { %v748_v39 = vmax.f32 %v726_v31, 0.0  ;;  %v872_v31 = vld [vmem:[#allocation7 + $0x98] sm:$0xff] }
 0x38a   : > { %v663_v26 = vpop.f32.mrf.mxu3 }
 0x38b   : > { %v729_v29 = vadd.f32 %v728_v25, %v663_v26  ;;  %v864_v26 = vld [vmem:[#allocation5 + $0xa0] sm:$0xff] }
 0x38d   : > { %v749_v36 = vmax.f32 %v729_v29, 0.0  ;;  %v871_v29 = vld [vmem:[#allocation7 + $0x90] sm:$0xff] }
 0x392   : > { %v666_v28 = vpop.f32.mrf.mxu3 }
 0x393   : > { %v732_v30 = vadd.f32 %v731_v27, %v666_v28  ;;  %v870_v27 = vld [vmem:[#allocation7 + $0x88] sm:$0xff] }
 0x394   : > { %v865_v28 = vld [vmem:[#allocation5 + $0xa8] sm:$0xff] }
 0x395   : > { %v750_v32 = vmax.f32 %v732_v30, 0.0  ;;  %v866_v30 = vld [vmem:[#allocation5 + $0xb0] sm:$0xff] }
 0x397   : > { %783 = vmatpush.msra.mxu1 %v750_v32  ;;  %v873_v32 = vld [vmem:[#allocation7 + $0xa0] sm:$0xff] }
 0x399   : > { %784 = vmatpush.msra.mxu1 %v749_v36  ;;  %v875_v36 = vld [vmem:[#allocation7 + $0xb0] sm:$0xff] }
 0x39b   : > { %785 = vmatpush.msra.mxu1 %v748_v39 }
 0x39d   : > { %786 = vmatpush.msra.mxu1 %v747_v8 }
 0x39f   : > { %787 = vmatpush.msra.mxu1 %v746_v0 }
 0x3a1   : > { %788 = vmatpush.msra.mxu1 %v745_v4 }
 0x3a3   : > { %789 = vmatpush.msra.mxu1 %v744_v7 }
 0x3a5   : > { %790 = vmatpush.msra.mxu1 %v743_v13 }
 0x3a6   : > { %1294 = vmatmul.msk.f32.vlgmr.msra.gmra.mxu1 %vm331_vm1, %v735_v12 }
 0x3ae   : > { %1295 = vmatmul.msk.f32.gmra.mxu1 %vm331_vm1, %v736_v45 }
 0x3b6   : > { %1296 = vmatmul.msk.f32.gmra.mxu1 %vm331_vm1, %v737_v46 }
 0x3be   : > { %1297 = vmatmul.msk.f32.gmra.mxu1 %vm331_vm1, %v738_v47 }
 0x3c6   : > { %1298 = vmatmul.msk.f32.gmra.mxu1 %vm331_vm1, %v739_v48 }
 0x3ce   : > { %1299 = vmatmul.msk.f32.gmra.mxu1 %vm331_vm1, %v740_v49 }
 0x3d6   : > { %1300 = vmatmul.msk.f32.gmra.mxu1 %vm331_vm1, %v741_v50 }
 0x3de   : > { %1301 = vmatmul.msk.f32.gmra.mxu1 %vm331_vm1, %v742_v51 }
 0x423   : > { %v792_v52 = vpop.f32.mrf.mxu1 }
 0x424   : > { %v2072_v10 = vadd.f32 %v792_v52, %v1991_v43  ;;  %v860_v43 = vld [vmem:[#allocation5 + $0x80] sm:$0xff] }
 0x42b   : > { %v795_v53 = vpop.f32.mrf.mxu1 }
 0x42c   : > { %v2077_v11 = vadd.f32 %v795_v53, %v1996_v44 }
 0x433   : > { %v798_v54 = vpop.f32.mrf.mxu1 }
 0x434   : > { %v2049_v60 = vadd.f32 %v798_v54, %v1968_v35 }
 0x436   : > { %v826_v63 = vmax.f32 %v2049_v60, 0.0 }
 0x43b   : > { %v801_v55 = vpop.f32.mrf.mxu1 }
 0x443   : > { %v804_v56 = vpop.f32.mrf.mxu1 }
 0x444   : > { %v2069_v9 = vadd.f32 %v804_v56, %v1988_v42  ;;  %v825_v42 = vmax.f32 %v2077_v11, 0.0 }
 0x44b   : > { %v807_v57 = vpop.f32.mrf.mxu1 }
 0x44c   : > { %v2044_v58 = vadd.f32 %v807_v57, %v1963_v33  ;;  %v2059_v33 = vadd.f32 %v801_v55, %v1978_v1  ;;  %v828_v1 = vmax.f32 %v2069_v9, 0.0 }
 0x44e   : > { %v829_v59 = vmax.f32 %v2044_v58, 0.0  ;;  %v827_v35 = vmax.f32 %v2059_v33, 0.0 }
 0x450   : > { %843 = vrot.lane.b32.xlu0 %v829_v59, %s1652_s7 }
 0x453   : > { %v810_v61 = vpop.f32.mrf.mxu1 }
 0x454   : > { %v2052_v62 = vadd.f32 %v810_v61, %v1971_v37 }
 0x456   : > { %v830_v2 = vmax.f32 %v2052_v62, 0.0 }
 0x458   : > { %837 = vrot.lane.b32.xlu0 %v826_v63, %s1652_s7  ;;  %845 = vrot.lane.b32.xlu2 %v830_v2, %s1652_s7 }
 0x45b   : > { %v813_v3 = vpop.f32.mrf.mxu1 }
 0x45c   : > { %v2062_v5 = vadd.f32 %v813_v3, %v1981_v41  ;;  %v824_v41 = vmax.f32 %v2072_v10, 0.0 }
 0x45e   : > { %v831_v37 = vmax.f32 %v2062_v5, 0.0 }
 0x460   : > { %839 = vrot.lane.b32.xlu2 %v827_v35, %s1652_s7  ;;  %847 = vrot.lane.b32.xlu1 %v831_v37, %s1652_s7 }
 0x461   : > { %974 = vmatpush.msra.mxu3 %v831_v37 }
 0x463   : > { %975 = vmatpush.msra.mxu3 %v830_v2 }
 0x465   : > { %976 = vmatpush.msra.mxu3 %v829_v59 }
 0x467   : > { %977 = vmatpush.msra.mxu3 %v828_v1 }
 0x468   : > { %833 = vrot.lane.b32.xlu2 %v824_v41, %s1652_s7  ;;  %841 = vrot.lane.b32.xlu1 %v828_v1, %s1652_s7 }
 0x469   : > { %978 = vmatpush.msra.mxu3 %v827_v35 }
 0x46b   : > { %979 = vmatpush.msra.mxu3 %v826_v63 }
 0x46d   : > { %980 = vmatpush.msra.mxu3 %v825_v42 }
 0x46f   : > { %981 = vmatpush.msra.mxu3 %v824_v41 }
 0x470   : > { %835 = vrot.lane.b32.xlu1 %v825_v42, %s1652_s7  ;;  %1318 = vmatmul.msk.f32.vlgmr.msra.gmra.mxu3 %vm331_vm1, %v860_v43  ;;  %v1008_v43 = vld [vmem:[#allocation8 + $0x80] sm:$0xff] }
 0x478   : > { %1319 = vmatmul.msk.f32.gmra.mxu3 %vm331_vm1, %v861_v14  ;;  %v1009_v14 = vld [vmem:[#allocation8 + $0x88] sm:$0xff] }
 0x480   : > { %1320 = vmatmul.msk.f32.gmra.mxu3 %vm331_vm1, %v862_v18  ;;  %v1013_v18 = vld [vmem:[#allocation8 + $0xa8] sm:$0xff] }
 0x488   : > { %1321 = vmatmul.msk.f32.gmra.mxu3 %vm331_vm1, %v863_v22 }
 0x490   : > { %1322 = vmatmul.msk.f32.gmra.mxu3 %vm331_vm1, %v864_v26 }
 0x498   : > { %1323 = vmatmul.msk.f32.gmra.mxu3 %vm331_vm1, %v865_v28 }
 0x4a0   : > { %1324 = vmatmul.msk.f32.gmra.mxu3 %vm331_vm1, %v866_v30 }
 0x4a8   : > { %1325 = vmatmul.msk.f32.gmra.mxu3 %vm331_vm1, %v867_v17 }
 0x4b2   : > { %v846_v44 = vpop.permute.xlu2 %845 }
 0x4ba   : > { %v840_v19 = vpop.permute.xlu2 %839 }
 0x4c2   : > { %v844_v16 = vpop.permute.xlu0 %843  ;;  %v834_v25 = vpop.permute.xlu2 %833 }
 0x4ca   : > { %v838_v21 = vpop.permute.xlu0 %837 }
 0x4d2   : > { %v848_v15 = vpop.permute.xlu1 %847 }
 0x4d3   : > { %1302 = vmatpush.msk.msra.mxu2 %vm832_vm3, %v848_v15  ;;  %v1011_v15 = vld [vmem:[#allocation8 + $0x98] sm:$0xff] }
 0x4d5   : > { %1303 = vmatpush.msk.msra.mxu2 %vm832_vm3, %v846_v44  ;;  %v1010_v44 = vld [vmem:[#allocation8 + $0x90] sm:$0xff] }
 0x4d7   : > { %1304 = vmatpush.msk.msra.mxu2 %vm832_vm3, %v844_v16  ;;  %v1012_v16 = vld [vmem:[#allocation8 + $0xa0] sm:$0xff] }
 0x4da   : > { %v842_v20 = vpop.permute.xlu1 %841 }
 0x4db   : > { %1305 = vmatpush.msk.msra.mxu2 %vm832_vm3, %v842_v20  ;;  %v1015_v20 = vld [vmem:[#allocation8 + $0xb8] sm:$0xff] }
 0x4dd   : > { %1306 = vmatpush.msk.msra.mxu2 %vm832_vm3, %v840_v19  ;;  %v1014_v19 = vld [vmem:[#allocation8 + $0xb0] sm:$0xff] }
 0x4df   : > { %1307 = vmatpush.msk.msra.mxu2 %vm832_vm3, %v838_v21 }
 0x4e2   : > { %v836_v23 = vpop.permute.xlu1 %835 }
 0x4e3   : > { %1308 = vmatpush.msk.msra.mxu2 %vm832_vm3, %v836_v23 }
 0x4e5   : > { %1309 = vmatpush.msk.msra.mxu2 %vm832_vm3, %v834_v25 }
 0x4e6   : > { %1310 = vmatmul.msk.f32.vlgmr.msra.gmra.mxu2 %vm331_vm1, %v869_v24 }
 0x4ee   : > { %1311 = vmatmul.msk.f32.gmra.mxu2 %vm331_vm1, %v870_v27 }
 0x4f3   : > { %v983_v39 = vpop.f32.mrf.mxu3 }
 0x4f6   : > { %1312 = vmatmul.msk.f32.gmra.mxu2 %vm331_vm1, %v871_v29 }
 0x4fb   : > { %v986_v40 = vpop.f32.mrf.mxu3 }
 0x4fe   : > { %1313 = vmatmul.msk.f32.gmra.mxu2 %vm331_vm1, %v872_v31 }
 0x503   : > { %v989_v0 = vpop.f32.mrf.mxu3 }
 0x506   : > { %1314 = vmatmul.msk.f32.gmra.mxu2 %vm331_vm1, %v873_v32 }
 0x50b   : > { %v992_v7 = vpop.f32.mrf.mxu3 }
 0x50e   : > { %1315 = vmatmul.msk.f32.gmra.mxu2 %vm331_vm1, %v874_v34 }
 0x513   : > { %v995_v45 = vpop.f32.mrf.mxu3 }
 0x516   : > { %1316 = vmatmul.msk.f32.gmra.mxu2 %vm331_vm1, %v875_v36 }
 0x51b   : > { %v998_v47 = vpop.f32.mrf.mxu3 }
 0x51e   : > { %1317 = vmatmul.msk.f32.gmra.mxu2 %vm331_vm1, %v876_v38 }
 0x523   : > { %v1001_v49 = vpop.f32.mrf.mxu3 }
 0x52b   : > { %v1004_v51 = vpop.f32.mrf.mxu3 }
 0x569   : > { %v918_v8 = vpop.f32.mrf.mxu2 }
 0x56a   : > { %v984_v6 = vadd.f32 %v983_v39, %v918_v8 }
 0x56c   : > { %v1016_v42 = vmax.f32 %v984_v6, 0.0 }
 0x571   : > { %v921_v4 = vpop.f32.mrf.mxu2 }
 0x572   : > { %v987_v35 = vadd.f32 %v986_v40, %v921_v4 }
 0x574   : > { %v1017_v41 = vmax.f32 %v987_v35, 0.0 }
 0x579   : > { %v924_v13 = vpop.f32.mrf.mxu2 }
 0x57a   : > { %v990_v2 = vadd.f32 %v989_v0, %v924_v13 }
 0x57c   : > { %v1018_v1 = vmax.f32 %v990_v2, 0.0 }
 0x581   : > { %v927_v12 = vpop.f32.mrf.mxu2 }
 0x582   : > { %v993_v61 = vadd.f32 %v992_v7, %v927_v12 }
 0x584   : > { %v1019_v37 = vmax.f32 %v993_v61, 0.0 }
 0x589   : > { %v930_v46 = vpop.f32.mrf.mxu2 }
 0x58a   : > { %v996_v57 = vadd.f32 %v995_v45, %v930_v46 }
 0x58c   : > { %v1020_v3 = vmax.f32 %v996_v57, 0.0 }
 0x591   : > { %v933_v48 = vpop.f32.mrf.mxu2 }
 0x592   : > { %v999_v55 = vadd.f32 %v998_v47, %v933_v48 }
 0x594   : > { %v1021_v63 = vmax.f32 %v999_v55, 0.0 }
 0x599   : > { %v936_v50 = vpop.f32.mrf.mxu2 }
 0x59a   : > { %v1002_v53 = vadd.f32 %v1001_v49, %v936_v50 }
 0x59c   : > { %v1022_v59 = vmax.f32 %v1002_v53, 0.0 }
 0x5a1   : > { %v939_v52 = vpop.f32.mrf.mxu2 }
 0x5a2   : > { %v1005_v54 = vadd.f32 %v1004_v51, %v939_v52 }
 0x5a4   : > { %v1023_v56 = vmax.f32 %v1005_v54, 0.0 }
 0x5a6   : > { %1056 = vmatpush.msra.mxu0 %v1023_v56 }
 0x5a8   : > { %1057 = vmatpush.msra.mxu0 %v1022_v59 }
 0x5aa   : > { %1058 = vmatpush.msra.mxu0 %v1021_v63 }
 0x5ac   : > { %1059 = vmatpush.msra.mxu0 %v1020_v3 }
 0x5ae   : > { %1060 = vmatpush.msra.mxu0 %v1019_v37 }
 0x5b0   : > { %1061 = vmatpush.msra.mxu0 %v1018_v1 }
 0x5b2   : > { %1062 = vmatpush.msra.mxu0 %v1017_v41 }
 0x5b4   : > { %1063 = vmatpush.msra.mxu0 %v1016_v42 }
 0x5b5   : > { %1326 = vmatmul.msk.f32.vlgmr.msra.gmra.mxu0 %vm331_vm1, %v1008_v43 }
 0x5bd   : > { %1327 = vmatmul.msk.f32.gmra.mxu0 %vm331_vm1, %v1009_v14 }
 0x5c5   : > { %1328 = vmatmul.msk.f32.gmra.mxu0 %vm331_vm1, %v1010_v44 }
 0x5cd   : > { %1329 = vmatmul.msk.f32.gmra.mxu0 %vm331_vm1, %v1011_v15 }
 0x5d5   : > { %1330 = vmatmul.msk.f32.gmra.mxu0 %vm331_vm1, %v1012_v16 }
 0x5dd   : > { %1331 = vmatmul.msk.f32.gmra.mxu0 %vm331_vm1, %v1013_v18 }
 0x5e5   : > { %1332 = vmatmul.msk.f32.gmra.mxu0 %vm331_vm1, %v1014_v19 }
 0x5ed   : > { %1333 = vmatmul.msk.f32.gmra.mxu0 %vm331_vm1, %v1015_v20 }
 0x632   : > { %v1065_v21 = vpop.f32.mrf.mxu0 }
 0x633   : > { %v1089_v22 = vadd.f32 %v1065_v21, %v2072_v10 }
 0x635   : > { %1097 = vst [vmem:[%s267_s8] sm:$0xff] %v1089_v22 }
 0x63a   : > { %v1068_v23 = vpop.f32.mrf.mxu0 }
 0x63b   : > { %v1090_v24 = vadd.f32 %v1068_v23, %v2077_v11 }
 0x63d   : > { %1098 = vst [vmem:[%s267_s8 + $0x8] sm:$0xff] %v1090_v24 }
 0x642   : > { %v1071_v25 = vpop.f32.mrf.mxu0 }
 0x643   : > { %v1091_v26 = vadd.f32 %v1071_v25, %v2049_v60 }
 0x645   : > { %1099 = vst [vmem:[%s267_s8 + $0x10] sm:$0xff] %v1091_v26 }
 0x64a   : > { %v1074_v27 = vpop.f32.mrf.mxu0 }
 0x64b   : > { %v1092_v28 = vadd.f32 %v1074_v27, %v2059_v33 }
 0x64d   : > { %1100 = vst [vmem:[%s267_s8 + $0x18] sm:$0xff] %v1092_v28 }
 0x652   : > { %v1077_v29 = vpop.f32.mrf.mxu0 }
 0x653   : > { %v1093_v30 = vadd.f32 %v1077_v29, %v2069_v9 }
 0x655   : > { %1101 = vst [vmem:[%s267_s8 + $0x20] sm:$0xff] %v1093_v30 }
 0x65a   : > { %v1080_v10 = vpop.f32.mrf.mxu0 }
 0x65b   : > { %v1094_v31 = vadd.f32 %v1080_v10, %v2044_v58 }
 0x65d   : > { %1102 = vst [vmem:[%s267_s8 + $0x28] sm:$0xff] %v1094_v31 }
 0x662   : > { %v1083_v11 = vpop.f32.mrf.mxu0 }
 0x663   : > { %v1095_v17 = vadd.f32 %v1083_v11, %v2052_v62 }
 0x665   : > { %1103 = vst [vmem:[%s267_s8 + $0x30] sm:$0xff] %v1095_v17 }
 0x66a   : > { %v1086_v60 = vpop.f32.mrf.mxu0 }
 0x66b   : > { %v1096_v33 = vadd.f32 %v1086_v60, %v2062_v5 }
 0x66d   : > { %1104 = vst [vmem:[%s267_s8 + $0x38] sm:$0xff] %v1096_v33 }
 0x66e   : > { %1596 = shalt.err (!%p1593_p10)
}
 0x66f   : > { %s1653_s30 = smov 128   ;;  %s1654_s26 = smov 8  }
 0x670   : > { %1379 = dma.vmem_to_hbm [thread:$0]  (%p1771_p3), %s1119_s29, 1024, %s1121_s6, %s1106_s5, %s1653_s30, %s1653_s30, %s1654_s26  }
 0x671 PF: > { %s1135_s7 = sand.u32 1, %s1631_s15   ;;  %p2178_p12 = scmp.ge.s32.totalorder %s1643_s18, 2 }
 0x672   : > { %s1136_s8 = scalar_lea.sflag [#allocation4], %s1135_s7 }
 0x673   : > { %p1396_p13 = pnand %p2178_p12, %p1715_p6 }
 0x675   : > { %p1397_p0 = pneg %p1396_p13 }
 0x677   : > { %1626 = dma.done.wait (%p1397_p0), %s1136_s8, 1024  }
 0x678   : > { %1628 = vsyncadd (%p1397_p0), %s1136_s8, 4294966272  ;;  %p19_p5 = scmp.ge.s32.totalorder %s1753_s23, 4   ;;  %s2179_s15 = smov %s1635_s16 }
 0x679   : > { %s2180_s16 = smov %s1639_s17  ;;  %s2181_s17 = smov %s1767_s27 }
 0x67a   : > { %s2182_s18 = smov %s1753_s23  ;;  %21 = sbr.rel (!%p19_p5) target bundleno = 7 (0x7), region = 99 }
 0x67f   :  { %1142 = vsyncpa [#allocation3], 1 }
 0x680   :  { %1144 = vsyncpa [#allocation3 + $0x1], 1 }
 0x681   :  { %1145 = vsyncpa [#allocation6], 1 }
 0x682   :  { %1146 = vsyncpa [#allocation9], 1 }
 0x683   :  { %1147 = vsyncpa [#allocation4], 1 }
 0x684   :  { %1149 = vsyncpa [#allocation4 + $0x1], 1 }

</bundles_post_ra>
